<compile_context>
chip_gen: v6e
topology: v6e:2x2x1
jax: 0.10.0
libtpu: 0.0.40
codegen_flags: <defaults>
</compile_context>

<pallas_src>
import functools

import jax
import jax.numpy as jnp
from jax import lax
from jax.experimental import pallas as pl
from jax.experimental.pallas import tpu as pltpu


def _additive_attn_kernel(h_ref, c_ref, wht_ref, vw_ref, ctx_ref, alpha_ref, *, l_valid):
    TB, Lp, H = h_ref.shape

    h = h_ref[...]                                            # (TB, Lp, H) f32

    # One batched MXU matmul in bf16 with f32 accumulation: (TB*Lp, H) @ (H, H).
    # Lp is a multiple of 8, so the reshapes are layout no-ops.
    h_bf = h.astype(jnp.bfloat16).reshape(TB * Lp, H)
    proj = jnp.dot(h_bf, wht_ref[...],
                   preferred_element_type=jnp.float32).reshape(TB, Lp, H)

    # c already holds s @ W_s^T + b_s + b_h (hoisted to the wrapper).
    # Elementwise / transcendental math stays f32 (v5e has no bf16 VPU/EUP).
    t = jnp.tanh(proj + c_ref[...])                           # (TB, Lp, H)

    # Scores: VPU multiply + lane reduce (no N=1 MXU matmul).
    # v's scalar bias is omitted: softmax over the seq axis is shift-invariant.
    e = jnp.sum(t * vw_ref[...], axis=-1)                     # (TB, Lp) lane-dense

    if Lp != l_valid:                                         # static: only if L was padded
        idx = lax.broadcasted_iota(jnp.int32, (TB, Lp), 1)
        e = jnp.where(idx < l_valid, e, -jnp.inf)             # padded alpha -> exactly 0

    # Softmax over the sequence (lane) axis.
    m = jnp.max(e, axis=-1, keepdims=True)
    p = jnp.exp(e - m)
    alpha = p * pl.reciprocal(jnp.sum(p, axis=-1, keepdims=True), approx=True)

    # Context: f32 VPU weighted sum over the sequence axis (padded rows of h are
    # zero and their alpha is zero, so they contribute nothing).
    # TODO(synk): if the bundle dump shows XLU relayout pressure from the
    # lane->sublane broadcast of alpha, switch to an MXU einsum ('bql,blh->bqh',
    # q == 1) — the MXU is idle during this phase.
    ctx = jnp.sum(alpha[:, :, None] * h, axis=1)              # (TB, H)

    ctx_ref[...] = ctx.astype(ctx_ref.dtype)
    alpha_ref[...] = alpha.astype(alpha_ref.dtype)


def _choose_block_batch(B, Lp, H):
    """Per-step batch tile TB (grid iterates over B // TB).

    TB must divide B and be either == B or a multiple of 8 (sublane rule for
    the (TB, H) / (TB, Lp) blocks). Budget is derated for v7x's 64 MiB VMEM.
    """
    budget = 4 * 1024 * 1024                     # double-buffered f32 h-tile budget
    bytes_per_batch_row = 2 * Lp * H * 4
    max_tb_mem = max(1, budget // bytes_per_batch_row)

    cands = [tb for tb in range(8, B + 1, 8) if B % tb == 0]
    if not cands:
        return B                                 # no legal multiple-of-8 divisor
    pool = [tb for tb in cands if tb <= max_tb_mem]
    if not pool:
        pool = [cands[0]]                        # fall back to TB=8 (never whole batch)

    # Prefer >= 4 grid steps (DMA overlap) while keeping MXU row occupancy.
    pref = [tb for tb in pool if B // tb >= 4 and tb * Lp >= 256]
    if pref:
        return max(pref)
    # Otherwise an even step count >= 2 (keeps both v7x TensorCores busy).
    even = [tb for tb in pool if (B // tb) >= 2 and (B // tb) % 2 == 0]
    if even:
        return max(even)
    return max(pool)


def additive_attention(h, s, wh, bh, ws, bs, vw, bv, *, block_b=None):
    """h: (B, L, H) f32; s: (B, H) f32. Returns (context (B, H), alpha (B, L, 1))."""
    B, L, H = h.shape
    # bv is unused: softmax over the sequence axis is invariant to v's scalar bias.

    # --- One-time XLA work (not re-run per grid step) ----------------------
    c = (s @ ws.T + bs + bh).reshape(B, 1, H)     # fused s-projection + both Linear biases
    wh_t = wh.T.astype(jnp.bfloat16)              # pre-transposed bf16 MXU operand
    vw2 = vw.reshape(1, 1, H)

    # Pad only the sequence axis (and only when needed) so in-kernel reshapes
    # are layout no-ops. The hidden axis is never padded: full-dim blocks
    # satisfy the (8,128) rule, so h is not copied through HBM.
    Lp = ((L + 7) // 8) * 8
    h_in = h if Lp == L else jnp.pad(h, ((0, 0), (0, Lp - L), (0, 0)))

    TB = block_b if block_b is not None else _choose_block_batch(B, Lp, H)
    assert B % TB == 0 and (TB == B or TB % 8 == 0), (B, TB)

    # VMEM accounting (v7x-derated): h double-buffer + ~3 block-sized f32 live
    # temporaries (proj, t, alpha*h) + the bf16 h copy + small operands/outputs.
    est = (2 * TB * Lp * H * 4        # h blocks (double-buffered, f32)
           + 3 * TB * Lp * H * 4      # live kernel temporaries
           + TB * Lp * H * 2          # bf16 cast of the h tile
           + 2 * TB * H * 4           # c blocks (double-buffered)
           + H * H * 2                # W_h^T (bf16, single-buffered)
           + 2 * TB * (H + Lp) * 4    # outputs (double-buffered)
           + (1 << 20))               # slack
    vmem_limit = int(min(48 * 1024 * 1024, max(32 * 1024 * 1024, 2 * est)))

    kernel = functools.partial(_additive_attn_kernel, l_valid=L)

    ctx, alpha_p = pl.pallas_call(
        kernel,
        out_shape=(
            jax.ShapeDtypeStruct((B, H), h.dtype),            # context
            jax.ShapeDtypeStruct((B, Lp), h.dtype),           # alpha, lane-dense
        ),
        grid_spec=pltpu.PrefetchScalarGridSpec(
            num_scalar_prefetch=0,
            grid=(B // TB,),
            in_specs=[
                pl.BlockSpec((TB, Lp, H), lambda b: (b, 0, 0)),       # h
                pl.BlockSpec((TB, 1, H), lambda b: (b, 0, 0)),        # fused s-proj + biases
                pl.BlockSpec((H, H), lambda b: (0, 0),
                             pipeline_mode=pl.Buffered(1)),           # W_h^T (resident)
                pl.BlockSpec((1, 1, H), lambda b: (0, 0, 0),
                             pipeline_mode=pl.Buffered(1)),           # v weight (resident)
            ],
            out_specs=[
                pl.BlockSpec((TB, H), lambda b: (b, 0)),              # context
                pl.BlockSpec((TB, Lp), lambda b: (b, 0)),             # alpha
            ],
        ),
        compiler_params=pltpu.CompilerParams(
            dimension_semantics=("parallel",),
            vmem_limit_bytes=vmem_limit),
    )(h_in, c, wh_t, vw2)

    return ctx, alpha_p[:, :L].reshape(B, L, 1)


def _reference(h, s, wh, bh, ws, bs, vw, bv):
    B, L, H = h.shape
    s_exp = jnp.broadcast_to(s[:, None, :], (B, L, H))
    e = jnp.tanh(h @ wh.T + bh + s_exp @ ws.T + bs) @ vw.T + bv        # (B, L, 1)
    alpha = jax.nn.softmax(e, axis=1)
    context = jnp.sum(alpha * h, axis=1)
    return context, alpha


if __name__ == "__main__":
    B, L, H = 2, 8, 32
    key = jax.random.PRNGKey(0)
    k = jax.random.split(key, 8)

    h = jax.random.normal(k[0], (B, L, H), dtype=jnp.float32)
    s = jax.random.normal(k[1], (B, H), dtype=jnp.float32)

    # Deterministic parameter init (uniform, like nn.Linear default scale).
    lim = 1.0 / jnp.sqrt(H)
    wh = jax.random.uniform(k[2], (H, H), jnp.float32, -lim, lim)
    bh = jax.random.uniform(k[3], (H,),   jnp.float32, -lim, lim)
    ws = jax.random.uniform(k[4], (H, H), jnp.float32, -lim, lim)
    bs = jax.random.uniform(k[5], (H,),   jnp.float32, -lim, lim)
    vw = jax.random.uniform(k[6], (1, H), jnp.float32, -lim, lim)
    bv = jax.random.uniform(k[7], (1,),   jnp.float32, -lim, lim)

    ctx, alpha = additive_attention(h, s, wh, bh, ws, bs, vw, bv)
    jax.block_until_ready((ctx, alpha))

    ctx_ref, alpha_ref = _reference(h, s, wh, bh, ws, bs, vw, bv)
    # Tolerance accounts for bf16 MXU operands + approx (EUP) reciprocal.
    assert jnp.allclose(ctx, ctx_ref, atol=5e-3, rtol=5e-3), \
        float(jnp.max(jnp.abs(ctx - ctx_ref)))
    assert jnp.allclose(alpha, alpha_ref, atol=5e-3, rtol=5e-3), \
        float(jnp.max(jnp.abs(alpha - alpha_ref)))

    print("KERNEL_OK")
</pallas_src>

<mosaic_0001>
module attributes {stable_mosaic.version = 11 : i64} {
  func.func @_additive_attn_kernel(%arg0: i32, %arg1: memref<2x8x32xf32, #tpu.memory_space<vmem>>, %arg2: memref<2x1x32xf32, #tpu.memory_space<vmem>>, %arg3: memref<32x32xbf16, #tpu.memory_space<vmem>>, %arg4: memref<1x1x32xf32, #tpu.memory_space<vmem>>, %arg5: memref<2x32xf32, #tpu.memory_space<vmem>>, %arg6: memref<2x8xf32, #tpu.memory_space<vmem>>) attributes {dimension_semantics = [#tpu.dimension_semantics<parallel>], iteration_bounds = array<i64: 1>, scalar_prefetch = 0 : i64, scratch_operands = 0 : i64, tpu.core_type = #tpu.core_type<tc>, window_params = [{transform_indices = @transform_0, window_bounds = array<i64: 2, 8, 32>}, {transform_indices = @transform_1, window_bounds = array<i64: 2, 1, 32>}, {pipeline_mode = #tpu.pipeline_mode<synchronous>, transform_indices = @transform_2, window_bounds = array<i64: 32, 32>}, {pipeline_mode = #tpu.pipeline_mode<synchronous>, transform_indices = @transform_3, window_bounds = array<i64: 1, 1, 32>}, {transform_indices = @transform_4, window_bounds = array<i64: 2, 32>}, {transform_indices = @transform_5, window_bounds = array<i64: 2, 8>}]} {
    %c0 = arith.constant 0 : index
    %c0_0 = arith.constant 0 : index
    %c0_1 = arith.constant 0 : index
    %0 = vector.load %arg1[%c0, %c0_0, %c0_1] : memref<2x8x32xf32, #tpu.memory_space<vmem>>, vector<2x8x32xf32>
    %1 = arith.truncf %0 : vector<2x8x32xf32> to vector<2x8x32xbf16>
    %2 = vector.shape_cast %1 : vector<2x8x32xbf16> to vector<16x32xbf16>
    %c0_2 = arith.constant 0 : index
    %c0_3 = arith.constant 0 : index
    %3 = vector.load %arg3[%c0_2, %c0_3] : memref<32x32xbf16, #tpu.memory_space<vmem>>, vector<32x32xbf16>
    %cst = arith.constant dense<0.000000e+00> : vector<16x32xf32>
    %4 = tpu.matmul %2, %3, %cst {dimension_numbers = #tpu.dot_dimension_numbers<[1], [0], [0], [1], [0, 0, 1, 1], [], []>} : vector<16x32xbf16>, vector<32x32xbf16>, vector<16x32xf32> -> vector<16x32xf32>
    %5 = vector.shape_cast %4 : vector<16x32xf32> to vector<2x8x32xf32>
    %c0_4 = arith.constant 0 : index
    %c0_5 = arith.constant 0 : index
    %c0_6 = arith.constant 0 : index
    %6 = vector.load %arg2[%c0_4, %c0_5, %c0_6] : memref<2x1x32xf32, #tpu.memory_space<vmem>>, vector<2x1x32xf32>
    %7 = vector.broadcast %6 : vector<2x1x32xf32> to vector<2x8x32xf32>
    %8 = arith.addf %5, %7 : vector<2x8x32xf32>
    %9 = math.tanh %8 : vector<2x8x32xf32>
    %c0_7 = arith.constant 0 : index
    %c0_8 = arith.constant 0 : index
    %c0_9 = arith.constant 0 : index
    %10 = vector.load %arg4[%c0_7, %c0_8, %c0_9] : memref<1x1x32xf32, #tpu.memory_space<vmem>>, vector<1x1x32xf32>
    %11 = vector.broadcast %10 : vector<1x1x32xf32> to vector<2x8x32xf32>
    %12 = arith.mulf %9, %11 : vector<2x8x32xf32>
    %cst_10 = arith.constant dense<0.000000e+00> : vector<2x8xf32>
    %13 = vector.multi_reduction <add>, %12, %cst_10 [2] : vector<2x8x32xf32> to vector<2x8xf32>
    %cst_11 = arith.constant dense<0xFF800000> : vector<2xf32>
    %14 = vector.multi_reduction <maximumf>, %13, %cst_11 [1] : vector<2x8xf32> to vector<2xf32>
    %15 = vector.shape_cast %14 : vector<2xf32> to vector<2x1xf32>
    %16 = vector.broadcast %15 : vector<2x1xf32> to vector<2x8xf32>
    %17 = arith.subf %13, %16 : vector<2x8xf32>
    %18 = math.exp %17 : vector<2x8xf32>
    %cst_12 = arith.constant dense<0.000000e+00> : vector<2xf32>
    %19 = vector.multi_reduction <add>, %18, %cst_12 [1] : vector<2x8xf32> to vector<2xf32>
    %20 = vector.shape_cast %19 : vector<2xf32> to vector<2x1xf32>
    %21 = tpu.reciprocal %20 {approx = true} : vector<2x1xf32> -> vector<2x1xf32>
    %22 = vector.broadcast %21 : vector<2x1xf32> to vector<2x8xf32>
    %23 = arith.mulf %18, %22 : vector<2x8xf32>
    %24 = vector.shape_cast %23 : vector<2x8xf32> to vector<2x8x1xf32>
    %25 = vector.broadcast %24 : vector<2x8x1xf32> to vector<2x8x32xf32>
    %26 = arith.mulf %25, %0 : vector<2x8x32xf32>
    %cst_13 = arith.constant dense<0.000000e+00> : vector<2x32xf32>
    %27 = vector.multi_reduction <add>, %26, %cst_13 [1] : vector<2x8x32xf32> to vector<2x32xf32>
    %c0_14 = arith.constant 0 : index
    %c0_15 = arith.constant 0 : index
    %28 = vector.load %arg5[%c0_14, %c0_15] : memref<2x32xf32, #tpu.memory_space<vmem>>, vector<2x32xf32>
    tpu.vector_store %arg5[%c0_14, %c0_15], %27 {strides = array<i32>} : memref<2x32xf32, #tpu.memory_space<vmem>>, vector<2x32xf32>,
    %c0_16 = arith.constant 0 : index
    %c0_17 = arith.constant 0 : index
    %29 = vector.load %arg6[%c0_16, %c0_17] : memref<2x8xf32, #tpu.memory_space<vmem>>, vector<2x8xf32>
    tpu.vector_store %arg6[%c0_16, %c0_17], %23 {strides = array<i32>} : memref<2x8xf32, #tpu.memory_space<vmem>>, vector<2x8xf32>,
    return
  }
  func.func @transform_0(%arg0: i32) -> (i32, i32, i32) {
    %c0_i32 = arith.constant 0 : i32
    %c0_i32_0 = arith.constant 0 : i32
    %c0_i32_1 = arith.constant 0 : i32
    return %arg0, %c0_i32, %c0_i32_0 : i32, i32, i32
  }
  func.func @transform_1(%arg0: i32) -> (i32, i32, i32) {
    %c0_i32 = arith.constant 0 : i32
    %c0_i32_0 = arith.constant 0 : i32
    %c0_i32_1 = arith.constant 0 : i32
    return %arg0, %c0_i32, %c0_i32_0 : i32, i32, i32
  }
  func.func @transform_2(%arg0: i32) -> (i32, i32) {
    %c0_i32 = arith.constant 0 : i32
    %c0_i32_0 = arith.constant 0 : i32
    %c0_i32_1 = arith.constant 0 : i32
    return %c0_i32, %c0_i32_0 : i32, i32
  }
  func.func @transform_3(%arg0: i32) -> (i32, i32, i32) {
    %c0_i32 = arith.constant 0 : i32
    %c0_i32_0 = arith.constant 0 : i32
    %c0_i32_1 = arith.constant 0 : i32
    %c0_i32_2 = arith.constant 0 : i32
    return %c0_i32, %c0_i32_0, %c0_i32_1 : i32, i32, i32
  }
  func.func @transform_4(%arg0: i32) -> (i32, i32) {
    %c0_i32 = arith.constant 0 : i32
    %c0_i32_0 = arith.constant 0 : i32
    return %arg0, %c0_i32 : i32, i32
  }
  func.func @transform_5(%arg0: i32) -> (i32, i32) {
    %c0_i32 = arith.constant 0 : i32
    %c0_i32_0 = arith.constant 0 : i32
    return %arg0, %c0_i32 : i32, i32
  }
}

</mosaic_0001>

<bundles_post_ra>
// kernel: tpu_custom_call.1
= control target key start
LH: loop header
LB: loop body
LE: loop exit
PB: predicated region body
PF: predicated region fallthrough
CT: control target
= control target key end

     0   :  { %11 = vsyncpa [#allocation3], 0  ;;  %s547_s0 = inlined_call_operand.hbm [shape: f32[2,8,32], index: 0, kind: input, shape index: {}]   ;;  %s548_s1 = inlined_call_operand.hbm [shape: f32[2,1,32], index: 1, kind: input, shape index: {}]   ;;  %s549_s2 = inlined_call_operand.hbm [shape: bf16[32,32], index: 2, kind: input, shape index: {}]   ;;  %s550_s3 = inlined_call_operand.vmem [shape: f32[1,1,32], index: 3, kind: input, shape index: {}]   ;;  %s551_s4 = inlined_call_operand.hbm [shape: f32[2,32], index: 4, kind: output, shape index: {0}]   ;;  %s552_s5 = inlined_call_operand.hbm [shape: f32[2,8], index: 5, kind: output, shape index: {1}]  }
   0x1   :  { %12 = vsyncpa [#allocation6], 0 }
   0x2   :  { %13 = vsyncpa [#allocation4], 0 }
   0x3   :  { %14 = vsyncpa [#allocation10], 0  ;;  %s465_s18 = smov [#allocation5]  }
   0x4   :  { %s32_s19 = sshll.u32 %s465_s18, 4  ;;  %s33_s19 = int_to_ptr.vmem [resolvable:$true] %s32_s19 }
   0x5   :  { %s365_s20 = scalar_lea.vmem %s33_s19, 32  ;;  %p370_p1 = scmp.lt.s32.totalorder %s33_s19, %s33_s19 }
   0x6   :  { %p366_p0 = scmp.ne.s32.totalorder %s33_s19, %s365_s20  ;;  %p371_p2 = scmp.lt.s32.totalorder %s365_s20, %s365_s20 }
   0x8   :  { %p372_p3 = por %p371_p2, %p370_p1 }
   0xa   :  { %p373_p4 = pnand %p372_p3, %p366_p0 }
   0xc   :  { %376 = shalt.err (!%p373_p4)
}
   0xd   :  { %s466_s21 = smov 16   ;;  %s467_s22 = smov 1  }
   0xe   :  { %38 = dma.hbm_to_vmem [thread:$0]  %s548_s1, 32, %s33_s19, [#allocation6], %s466_s21, %s466_s21, %s467_s22  }
   0xf   :  { %s468_s25 = smov [#allocation2]  }
  0x10   :  { %s20_s26 = sshll.u32 %s468_s25, 4  ;;  %s21_s26 = int_to_ptr.vmem [resolvable:$true] %s20_s26 }
  0x11   :  { %s385_s27 = scalar_lea.vmem %s21_s26, 256  ;;  %p390_p6 = scmp.lt.s32.totalorder %s21_s26, %s21_s26 }
  0x12   :  { %p386_p5 = scmp.ne.s32.totalorder %s21_s26, %s385_s27  ;;  %p391_p7 = scmp.lt.s32.totalorder %s385_s27, %s385_s27 }
  0x14   :  { %p392_p8 = por %p391_p7, %p390_p6 }
  0x16   :  { %p393_p9 = pnand %p392_p8, %p386_p5 }
  0x18   :  { %396 = shalt.err (!%p393_p9)
}
  0x19   :  { %s469_s28 = smov 128   ;;  %s470_s29 = smov 8  }
  0x1a   :  { %26 = dma.hbm_to_vmem [thread:$0]  %s547_s0, 256, %s21_s26, [#allocation3], %s469_s28, %s469_s28, %s470_s29  }
  0x1b   :  { %s471_s7 = smov [#allocation7]  }
  0x1c   :  { %s44_s8 = sshll.u32 %s471_s7, 4  ;;  %s45_s8 = int_to_ptr.vmem [resolvable:$true] %s44_s8 }
  0x1d   :  { %s405_s1 = scalar_lea.vmem %s45_s8, 256  ;;  %p410_p11 = scmp.lt.s32.totalorder %s45_s8, %s45_s8 }
  0x1e   :  { %p406_p10 = scmp.ne.s32.totalorder %s45_s8, %s405_s1  ;;  %p411_p12 = scmp.lt.s32.totalorder %s405_s1, %s405_s1 }
  0x20   :  { %p412_p13 = por %p411_p12, %p410_p11 }
  0x22   :  { %p413_p0 = pnand %p412_p13, %p406_p10 }
  0x24   :  { %416 = shalt.err (!%p413_p0)
}
  0x25   :  { %s472_s9 = smov 64   ;;  %s473_s10 = smov 4  }
  0x26   :  { %50 = dma.hbm_to_vmem [thread:$0]  %s549_s2, 256, %s45_s8, [#allocation6], %s472_s9, %s472_s9, %s473_s10  }
  0x27   :  { %457 = dma.done.wait [#allocation3], 256  }
  0x28   :  { %458 = vsyncadd [#allocation3], 4294967040 }
  0x29   :  { %459 = dma.done.wait [#allocation6], 288  }
  0x2a   :  { %460 = vsyncadd [#allocation6], 4294967008  ;;  %v474_v0 = vmov 0.0   ;;  %vm475_vm0 = vmmov 0   ;;  %v345_v1 = vld [vmem:[#allocation7 + $0x8] sm:$0xff]   ;;  %v346_v2 = vld [vmem:[#allocation7] sm:$0xff]   ;;  %v168_v21 = vlaneseq }
  0x2b   :  { %321 = vmatprep.subr.bf16.mxu0 %v474_v0  ;;  %325 = vmatprep.mubr.msk.bf16.mxu0 %vm475_vm0, %v474_v0  ;;  %v518_v3 = vld [vmem:[#allocation2] sm:$0xff]  ;;  %v520_v4 = vld [vmem:[#allocation2 + $0x8] sm:$0xff]  ;;  %vm88_vm1 = vcmask 261120   ;;  %v314_v6 = vld [vmem:[#allocation5] ss:$0 sm:$0xff]  ;;  %vm178_vm2 = vcmask 1041409  }
  0x2c   :  { %322 = vmatpush3.bf16.msra.mxu0 %v345_v1  ;;  %v317_v5 = vpack.c.bf16 %v520_v4, %v518_v3  ;;  %v315_v10 = vld [vmem:[#allocation5 + $0x1] ss:$0 sm:$0xff]  ;;  %v316_v14 = vld [vmem:[%s550_s3] ss:$0 sm:$0xff]  ;;  %v169_v22 = vand.u32 127, %v168_v21  ;;  %v171_v23 = vshrl.u32 %v168_v21, 7 }
  0x2d   :  { %323 = vmatprep.subr.bf16.mxu0 %v474_v0  ;;  %vm181_vm3 = vcmask 58368   ;;  %v476_v31 = vmov 0   ;;  %s477_s3 = smov [#allocation9]  }
  0x2e   :  { %v172_v25 = vsub.s32 %v169_v22, %v171_v23  ;;  %344 = vset.pattern.permute.xlu0 %v476_v31  ;;  %343 = vset.pattern.permute.xlu1 %v476_v31  ;;  %v188_v32 = vsub.s32 0, %v171_v23  ;;  %v192_v33 = vsub.s32 1, %v171_v23  ;;  %s296_s13 = sshll.u32 %s477_s3, 4  ;;  %s297_s13 = int_to_ptr.vmem [resolvable:$true] %s296_s13 }
  0x2f   :  { %s417_s14 = scalar_lea.vmem %s297_s13, 32  ;;  %p422_p2 = scmp.lt.s32.totalorder %s297_s13, %s297_s13 }
  0x30   :  { %324 = vmatpush3.bf16.msra.mxu0 %v346_v2  ;;  %p418_p1 = scmp.ne.s32.totalorder %s297_s13, %s417_s14  ;;  %p423_p3 = scmp.lt.s32.totalorder %s417_s14, %s417_s14 }
  0x32   :  { %p424_p4 = por %p423_p3, %p422_p2 }
  0x33   :  { %326 = vmatmul.mubr.msk.bf16.vlgmr.msra.gmra.mxu0 %vm88_vm1, %v317_v5 }
  0x34   :  { %p425_p5 = pnand %p424_p4, %p418_p1 }
  0xf3   :  { %v126_v7 = vpop.f32.mrf.mxu0 }
  0xf4   :  { %v147_v8 = vadd.f32 %v314_v6, %v126_v7 }
  0xf5   :  { %v327_v9 = vpop.f32.mrf.mxu0 }
  0xf6   :  { %347 = vtanh.f32 %v147_v8 }
  0xf7   :  { %v129_v11 = vpop.f32.mrf.mxu0 }
  0xf8   :  { %v148_v12 = vadd.f32 %v315_v10, %v129_v11 }
  0xf9   :  { %v328_v13 = vpop.f32.mrf.mxu0 }
  0xfa   :  { %349 = vtanh.f32 %v148_v12 }
 0x103   :  { %v348_v15 = vpop.eup %347 }
 0x104   :  { %v158_v16 = vmul.f32 %v348_v15, %v316_v14 }
 0x106   :  { %v160_v17 = vsel %vm88_vm1, %v158_v16, 0.0 }
 0x107   :  { %v350_v18 = vpop.eup %349  ;;  %161 = vadd.xlane.f32.xlu0 %v160_v17 }
 0x108   :  { %v159_v19 = vmul.f32 %v350_v18, %v316_v14 }
 0x10a   :  { %v163_v20 = vsel %vm88_vm1, %v159_v19, 0.0 }
 0x10b   :  { %164 = vadd.xlane.f32.xlu0 %v163_v20 }
 0x190   :  { %v162_v24 = vpop.xlane.xlu0 %161 }
 0x191   :  { %v173_v27 = vrot.slane %v162_v24, %v172_v25 }
 0x194   :  { %v165_v26 = vpop.xlane.xlu0 %164 }
 0x195   :  { %v177_v28 = vrot.slane %v165_v26, %v172_v25 }
 0x197   :  { %v179_v29 = vsel %vm178_vm2, %v177_v28, %v173_v27 }
 0x198   :  { %v182_v30 = vsel %vm181_vm3, %v179_v29, -inf }
 0x199   :  { %183 = vmax.xlane.f32.xlu1 %v182_v30 }
 0x222   :  { %v184_v34 = vpop.xlane.xlu1 %183 }
 0x223   :  { %v189_v35 = vrot.slane %v184_v34, %v188_v32  ;;  %v193_v36 = vrot.slane %v184_v34, %v192_v33 }
 0x225   :  { %v196_v37 = vsub.f32 %v162_v24, %v189_v35  ;;  %v197_v38 = vsub.f32 %v165_v26, %v193_v36 }
 0x227   :  { %v198_v39 = vmul.f32 1.442695, %v196_v37  ;;  %v200_v40 = vmul.f32 1.442695, %v197_v38 }
 0x229   :  { %351 = vpow2.f32 %v198_v39 }
 0x22a   :  { %353 = vpow2.f32 %v200_v40 }
 0x236   :  { %v352_v41 = vpop.eup %351 }
 0x237   :  { %v354_v42 = vpop.eup %353  ;;  %205 = vperm.xlu1 %343, %v352_v41  }
 0x238   :  { %208 = vperm.xlu0 %344, %v354_v42  }
 0x2b2   :  { %v206_v43 = vpop.permute.xlu1 %205 }
 0x2b3   :  { %v209_v44 = vpop.permute.xlu0 %208  ;;  %v213_v45 = vrot.slane %v206_v43, %v172_v25 }
 0x2b4   :  { %v217_v46 = vrot.slane %v209_v44, %v172_v25 }
 0x2b6   :  { %v218_v47 = vsel %vm178_vm2, %v217_v46, %v213_v45 }
 0x2b7   :  { %v220_v48 = vsel %vm181_vm3, %v218_v47, 0.0 }
 0x2b8   :  { %221 = vadd.xlane.f32.xlu1 %v220_v48 }
 0x341   :  { %v222_v49 = vpop.xlane.xlu1 %221 }
 0x342   :  { %355 = vrcp.f32 %v222_v49 }
 0x34f   :  { %v356_v50 = vpop.eup %355 }
 0x350   :  { %v228_v51 = vrot.slane %v356_v50, %v188_v32  ;;  %v232_v53 = vrot.slane %v356_v50, %v192_v33 }
 0x352   :  { %v235_v52 = vmul.f32 %v352_v41, %v228_v51  ;;  %v236_v54 = vmul.f32 %v354_v42, %v232_v53 }
 0x354   :  { %239 = vperm.xlu0 %344, %v235_v52  }
 0x358   :  { %244 = vperm.xlu0 %344, %v236_v54  }
 0x3cf   :  { %v240_v55 = vpop.permute.xlu0 %239 }
 0x3d0   :  { %v247_v56 = vmul.f32 %v240_v55, %v518_v3  ;;  %v272_v60 = vrot.slane %v240_v55, %v172_v25 }
 0x3d2   :  { %v249_v57 = vsel %vm88_vm1, %v247_v56, 0.0 }
 0x3d3   :  { %v250_v58 = vrot.slane %v249_v57, 4  ;;  %v245_v59 = vpop.permute.xlu0 %244 }
 0x3d4   :  { %v248_v61 = vmul.f32 %v245_v59, %v520_v4  ;;  %v276_v62 = vrot.slane %v245_v59, %v172_v25 }
 0x3d5   :  { %v251_v63 = vadd.f32 %v250_v58, %v249_v57 }
 0x3d6   :  { %v256_v0 = vsel %vm88_vm1, %v248_v61, 0.0  ;;  %v277_v1 = vsel %vm178_vm2, %v276_v62, %v272_v60 }
 0x3d7   :  { %v252_v2 = vrot.slane %v251_v63, 2  ;;  %v257_v5 = vrot.slane %v256_v0, 4  ;;  %279 = vst.msk [vmem:[#allocation9] sm:$0x3] %vm181_vm3, %v277_v1 }
 0x3d8   :  { %428 = shalt.err (!%p425_p5)
}
 0x3d9   :  { %299 = dma.vmem_to_hbm [thread:$0]  %s297_s13, 32, %s552_s5, [#allocation10]   ;;  %v253_v3 = vadd.f32 %v252_v2, %v251_v63  ;;  %v258_v4 = vadd.f32 %v257_v5, %v256_v0  ;;  %vm267_vm4 = vcmask 254976  }
 0x3da   :  { %s478_s17 = smov [#allocation8]  }
 0x3db   :  { %v259_v6 = vrot.slane %v258_v4, 2  ;;  %v254_v7 = vrot.slane %v253_v3, 1  ;;  %s286_s18 = sshll.u32 %s478_s17, 4  ;;  %s287_s18 = int_to_ptr.vmem [resolvable:$true] %s286_s18 }
 0x3dc   :  { %s437_s19 = scalar_lea.vmem %s287_s18, 32  ;;  %p442_p7 = scmp.lt.s32.totalorder %s287_s18, %s287_s18 }
 0x3dd   :  { %v260_v8 = vadd.f32 %v259_v6, %v258_v4  ;;  %v255_v11 = vadd.f32 %v254_v7, %v253_v3  ;;  %p438_p6 = scmp.ne.s32.totalorder %s287_s18, %s437_s19  ;;  %p443_p8 = scmp.lt.s32.totalorder %s437_s19, %s437_s19 }
 0x3df   :  { %v261_v9 = vrot.slane %v260_v8, 1  ;;  %p444_p9 = por %p443_p8, %p442_p7 }
 0x3e1   :  { %v262_v10 = vadd.f32 %v261_v9, %v260_v8  ;;  %p445_p10 = pnand %p444_p9, %p438_p6 }
 0x3e3   :  { %v265_v12 = vsel %vm178_vm2, %v262_v10, %v255_v11 }
 0x3e4   :  { %268 = vst.msk [vmem:[#allocation8] sm:$0x3] %vm267_vm4, %v265_v12 }
 0x3e5   :  { %448 = shalt.err (!%p445_p10)
}
 0x3e6   :  { %289 = dma.vmem_to_hbm [thread:$0]  %s287_s18, 32, %s551_s4, [#allocation4]  }
 0x3e7   :  { %461 = dma.done.wait [#allocation4], 32  }
 0x3e8   :  { %462 = vsyncadd [#allocation4], 4294967264 }
 0x3e9   :  { %463 = dma.done.wait [#allocation10], 32  }
 0x3ea   :  { %464 = vsyncadd [#allocation10], 4294967264 }
 0x3eb   :  { %306 = vsyncpa [#allocation3], 1 }
 0x3ec   :  { %307 = vsyncpa [#allocation6], 1 }
 0x3ed   :  { %308 = vsyncpa [#allocation4], 1 }
 0x3ee   :  { %309 = vsyncpa [#allocation10], 1 }

</bundles_post_ra>
